<compile_context>
chip_gen: v7x
topology: tpu7x:2x2x1
jax: 0.10.0
libtpu: 0.0.40
codegen_flags: <defaults>
</compile_context>

<pallas_src>
import jax
import jax.numpy as jnp
from jax.experimental import pallas as pl
from jax.experimental.pallas import tpu as pltpu


def _dropout_kernel(m_ref, x_ref, o_ref):
    # m_ref: (ROW_TILE, 1) per-row keep value; x_ref / o_ref: (ROW_TILE, T_TILE).
    # Implicit (rows,1)*(rows,T) broadcast -> VPU lane splat, no materialized mask tile.
    o_ref[...] = x_ref[...] * m_ref[...]


def _tile_budget_bytes() -> int:
    """Per-tile byte budget, gated on TPU generation (conservative for v5e/unknown)."""
    try:
        kind = jax.devices()[0].device_kind.lower()
    except Exception:
        kind = ""
    if ("v6" in kind) or ("v7" in kind):
        return 4 << 20   # 4 MiB tiles: in+out double-buffered ~16 MiB -> fits v6e/v7x VMEM
    return 1 << 20       # 1 MiB tiles: ~4 MiB footprint -> fits v5e's 16 MiB default scoped VMEM


def dropout_layer_forward(x, key, p: float = 0.5, *,
                          force_pallas: bool = False,
                          donate_input: bool = False):
    """Per-channel Bernoulli(1-p) mask (kept value 0.5/(1-p)) applied to (B, C, T) input.

    Matches dropout_layer.forward: Dropout(p)(ones(C)) * (1/1 - 0.5), broadcast over
    batch and time.  At the module's p=0.5 the kept-channel value is exactly 1.0.
    """
    B, C, T = x.shape
    dtype = x.dtype
    itemsize = jnp.dtype(dtype).itemsize

    # Per-channel mask: kept -> (1/(1-p)) * 0.5, dropped -> 0.  O(C), done once in XLA.
    scale = 0.5 / (1.0 - p)
    keep = jax.random.bernoulli(key, 1.0 - p, (C,)).astype(dtype) * jnp.asarray(scale, dtype)

    rows = B * C
    total_bytes = rows * T * itemsize
    if total_bytes < (256 << 10) and not force_pallas:
        # Tiny inputs: pallas_call launch + pipeline prologue dominates; fused XLA is faster.
        return x * keep[None, :, None]

    # Flatten to (rows, T); row r = b*C + c.
    x2 = x.reshape(rows, T)
    mask_rows = jnp.tile(keep, (B,)).reshape(rows, 1)

    # ---- tile selection ------------------------------------------------------
    granule = {1: 32, 2: 16, 4: 8}.get(itemsize, 8)       # packed sublane granule per dtype
    budget = _tile_budget_bytes()

    t_cap = max(128, min(2048, ((budget // (granule * itemsize)) // 128) * 128))
    T_TILE = T if T <= t_cap else t_cap                   # full dim (always legal) or mult of 128

    row_fit = budget // max(1, T_TILE * itemsize)
    ROW_TILE = max(granule, (row_fit // granule) * granule)
    if ROW_TILE >= rows:
        ROW_TILE = rows                                    # full dim -> always legal
    # --------------------------------------------------------------------------

    grid = (pl.cdiv(rows, ROW_TILE), pl.cdiv(T, T_TILE))   # partial boundary blocks handled by Pallas

    compiler_kwargs = dict(dimension_semantics=("parallel", "parallel"))
    if budget > (1 << 20):
        # Large-tile path (v6e/v7x): give the pipeline headroom; 48 MiB < 64 MiB physical on v7x.
        compiler_kwargs["vmem_limit_bytes"] = 48 << 20

    out = pl.pallas_call(
        _dropout_kernel,
        out_shape=jax.ShapeDtypeStruct((rows, T), dtype),   # exact shape: no pad, no post-slice
        grid_spec=pltpu.PrefetchScalarGridSpec(
            num_scalar_prefetch=0,
            grid=grid,
            in_specs=[
                pl.BlockSpec((ROW_TILE, 1), lambda i, j: (i, 0)),        # per-row mask (tiny)
                pl.BlockSpec((ROW_TILE, T_TILE), lambda i, j: (i, j)),   # x tile
            ],
            out_specs=pl.BlockSpec((ROW_TILE, T_TILE), lambda i, j: (i, j)),
        ),
        compiler_params=pltpu.CompilerParams(**compiler_kwargs),
        cost_estimate=pl.CostEstimate(
            flops=rows * T,
            transcendentals=0,
            bytes_accessed=2 * rows * T * itemsize + rows * itemsize,
        ),
        input_output_aliases=({1: 0} if donate_input else {}),
    )(mask_rows, x2)

    return out.reshape(B, C, T)


if __name__ == "__main__":
    # Small shapes consistent with the 3-D forward: batch=2, channels=4, seq=16
    B, C, T = 2, 4, 16
    root = jax.random.PRNGKey(0)
    data_key, mask_key = jax.random.split(root)

    x = jax.random.normal(data_key, (B, C, T), dtype=jnp.float32)

    # Exercise the Pallas path even at this tiny size (default wrapper would bypass it).
    out = dropout_layer_forward(x, mask_key, force_pallas=True)
    out = jax.block_until_ready(out)
    assert out.shape == (B, C, T) and out.dtype == x.dtype

    # Reference: same per-channel Bernoulli(0.5) keep mask (kept value 1.0), broadcast over B, T.
    keep_ref = jax.random.bernoulli(mask_key, 0.5, (C,)).astype(x.dtype)
    expected = x * keep_ref[None, :, None]
    assert jnp.allclose(out, expected), "pallas kernel output does not match reference"

    # The tiny-input XLA bypass must agree with the kernel path.
    out_bypass = jax.block_until_ready(dropout_layer_forward(x, mask_key))
    assert jnp.allclose(out_bypass, expected), "bypass path does not match reference"

    # Sanity: every channel is either fully zeroed or passed through unchanged.
    for c in range(C):
        ch_out, ch_in = out[:, c, :], x[:, c, :]
        ok = bool(jnp.allclose(ch_out, 0.0)) or bool(jnp.allclose(ch_out, ch_in))
        assert ok, f"channel {c} is neither dropped nor identity"

    print("KERNEL_OK")
</pallas_src>

<mosaic_0001>
module attributes {stable_mosaic.version = 11 : i64} {
  func.func @_dropout_kernel(%arg0: i32, %arg1: i32, %arg2: memref<8x1xf32, #tpu.memory_space<vmem>>, %arg3: memref<8x16xf32, #tpu.memory_space<vmem>>, %arg4: memref<8x16xf32, #tpu.memory_space<vmem>>) attributes {dimension_semantics = [#tpu.dimension_semantics<parallel>, #tpu.dimension_semantics<parallel>], iteration_bounds = array<i64: 1, 1>, scalar_prefetch = 0 : i64, scratch_operands = 0 : i64, tpu.core_type = #tpu.core_type<tc>, window_params = [{transform_indices = @transform_0, window_bounds = array<i64: 8, 1>}, {transform_indices = @transform_1, window_bounds = array<i64: 8, 16>}, {transform_indices = @transform_2, window_bounds = array<i64: 8, 16>}]} {
    %c0 = arith.constant 0 : index
    %c0_0 = arith.constant 0 : index
    %0 = vector.load %arg3[%c0, %c0_0] : memref<8x16xf32, #tpu.memory_space<vmem>>, vector<8x16xf32>
    %c0_1 = arith.constant 0 : index
    %c0_2 = arith.constant 0 : index
    %1 = vector.load %arg2[%c0_1, %c0_2] : memref<8x1xf32, #tpu.memory_space<vmem>>, vector<8x1xf32>
    %2 = vector.broadcast %1 : vector<8x1xf32> to vector<8x16xf32>
    %3 = arith.mulf %0, %2 : vector<8x16xf32>
    %c0_3 = arith.constant 0 : index
    %c0_4 = arith.constant 0 : index
    %4 = vector.load %arg4[%c0_3, %c0_4] : memref<8x16xf32, #tpu.memory_space<vmem>>, vector<8x16xf32>
    tpu.vector_store %arg4[%c0_3, %c0_4], %3 {strides = array<i32>} : memref<8x16xf32, #tpu.memory_space<vmem>>, vector<8x16xf32>,
    return
  }
  func.func @transform_0(%arg0: i32, %arg1: i32) -> (i32, i32) {
    %c0_i32 = arith.constant 0 : i32
    %c0_i32_0 = arith.constant 0 : i32
    return %arg0, %c0_i32 : i32, i32
  }
  func.func @transform_1(%arg0: i32, %arg1: i32) -> (i32, i32) {
    %c0_i32 = arith.constant 0 : i32
    return %arg0, %arg1 : i32, i32
  }
  func.func @transform_2(%arg0: i32, %arg1: i32) -> (i32, i32) {
    %c0_i32 = arith.constant 0 : i32
    return %arg0, %arg1 : i32, i32
  }
}

</mosaic_0001>

<bundles_post_ra>
// kernel: tpu_custom_call.1
= control target key start
LH: loop header
LB: loop body
LE: loop exit
PB: predicated region body
PF: predicated region fallthrough
CT: control target
= control target key end

     0   :  { %s98_s0 = inlined_call_operand.vmem [shape: f32[8,1], index: 0, kind: input, shape index: {}]   ;;  %s99_s1 = inlined_call_operand.vmem [shape: f32[8,16], index: 1, kind: input, shape index: {}]   ;;  %s100_s2 = inlined_call_operand.hbm [shape: f32[8,16], index: 2, kind: output, shape index: {}]  }
   0x1   :  { %v13_v0 = vld [vmem:[%s98_s0] sm:$0xff] }
   0x2   :  { %7 = vsyncpa [#allocation3], 0  ;;  %v63_v1 = vmov 0   ;;  %v12_v2 = vld [vmem:[%s99_s1] sm:$0xff]  ;;  %s64_s13 = smov [#allocation2]   ;;  %vm20_vm0 = vcmask 130048  }
   0x3   :  { %38 = vset.pattern.permute.xlu0 %v63_v1  ;;  %s28_s14 = sshll.u32 %s64_s13, 4  ;;  %s29_s14 = int_to_ptr.vmem [resolvable:$true] %s28_s14 }
   0x4   :  { %16 = vperm.xlu0 %38, %v13_v0   ;;  %s39_s15 = scalar_lea.vmem %s29_s14, 128  ;;  %p44_p1 = scmp.lt.s32.totalorder %s29_s14, %s29_s14 }
   0x5   :  { %p40_p0 = scmp.ne.s32.totalorder %s29_s14, %s39_s15  ;;  %p45_p2 = scmp.lt.s32.totalorder %s39_s15, %s39_s15 }
   0x7   :  { %p46_p3 = por %p45_p2, %p44_p1 }
   0x9   :  { %p47_p4 = pnand %p46_p3, %p40_p0 }
  0x83   :  { %v17_v3 = vpop.permute.xlu0 %16 }
  0x84   :  { %v19_v4 = vmul.f32 %v17_v3, %v12_v2 }
  0x86   :  { %21 = vst.msk [vmem:[#allocation2] sm:$0xff] %vm20_vm0, %v19_v4 }
  0x87   :  { %50 = shalt.err (!%p47_p4)
}
  0x88   :  { %s51_s17 = scalar_lea.hbm %s100_s2, 128 }
  0x89   :  { %p52_p5 = scmp.ne.s32.totalorder %s100_s2, %s51_s17  ;;  %p55_p6 = scmp.lt.u32.totalorder %s51_s17, %s100_s2 }
  0x8b   :  { %p57_p7 = pnand %p55_p6, %p52_p5 }
  0x8d   :  { %60 = shalt.err (!%p57_p7)
}
  0x8e   :  { %31 = dma.vmem_to_hbm [thread:$0]  %s29_s14, 128, %s100_s2, [#allocation3]  }
  0x8f   :  { %61 = dma.done.wait [#allocation3], 128  }
  0x90   :  { %62 = vsyncadd [#allocation3], 4294967168 }
  0x91   :  { %35 = vsyncpa [#allocation3], 1 }

</bundles_post_ra>
